<compile_context>
chip_gen: v7x
topology: tpu7x:2x2x1
jax: 0.10.0
libtpu: 0.0.40
codegen_flags: <defaults>
</compile_context>

<pallas_src>
import functools

import jax
import jax.numpy as jnp
from jax.experimental import pallas as pl
from jax.experimental.pallas import tpu as pltpu


def _round_up(x, m):
    return (x + m - 1) // m * m


def _magnn_gc_kernel(tmask_ref, feat_ref, wstack_ref, fcb_ref,
                     hfc_ref, h_ref, *, num_types, hidden, out_dim, type_blk):
    """One node-tile of MAGNN_gc_layer (per-type projection + fused fc).

    tmask_ref : (TN, 1)      int32  node-type ids (garbage in OOB tail rows)
    feat_ref  : (TN, Din)    f32    node features (cast to bf16 in-kernel)
    wstack_ref: (Din, T*BLK) bf16   per-type 128-aligned blocks:
                cols [t*BLK        : t*BLK+H]       -> W_t         (h path)
                cols [t*BLK+H      : t*BLK+H+Dout]  -> W_t @ fc_w  (fc path)
                cols [t*BLK+H+Dout : (t+1)*BLK]     -> 0 (lane pad)
    fcb_ref   : (1, Dout)    f32    fc bias
    hfc_ref   : (TN, Dout)   f32    output h_fc
    h_ref     : (TN, H)      f32    output h
    """
    feat = feat_ref[...].astype(jnp.bfloat16)            # in-kernel cast
    tn = feat.shape[0]

    # Single lane-stacked MXU matmul: bf16 inputs, f32 accumulation.
    proj = jnp.dot(feat, wstack_ref[...],
                   preferred_element_type=jnp.float32)   # (TN, T*BLK)

    # Hoisted lane-broadcast of the type ids; the per-type loop is then pure
    # VPU compare+select on 128-aligned views of proj (no lane shuffles).
    tmask_b = jnp.broadcast_to(tmask_ref[...], (tn, type_blk))   # (TN, BLK)
    combined = jnp.zeros((tn, type_blk), jnp.float32)            # [h | hfc | pad]
    for t in range(num_types):                                   # T static & small
        combined = jnp.where(tmask_b == t,
                             proj[:, t * type_blk:(t + 1) * type_blk],
                             combined)

    h_ref[...] = combined[:, :hidden]
    hfc_ref[...] = combined[:, hidden:hidden + out_dim] + fcb_ref[...]


def magnn_gc_forward(features, type_mask, w_types, fc_w, fc_b, *, tile_n=None):
    """Returns (h_fc, h) like the canonical MAGNN_gc_layer.forward."""
    n, in_dim = features.shape
    num_types, _, hidden = w_types.shape
    out_dim = fc_w.shape[1]

    if tile_n is None:
        # >= 4 grid steps when N allows (>= 2 per v7x TensorCore so each core
        # still double-buffers); cap at 512 rows — the per-step matmul is tiny
        # (K = in_dim), so bigger tiles only amortize the ~0.35us/step cost.
        tile_n = min(512, _round_up(max(-(-n // 4), 8), 8))
    grid = pl.cdiv(n, tile_n)

    # Per-type RHS block, 128-lane aligned: [ W_t | W_t@fc_w | zero pad ].
    # fc is pre-fused per type:
    #   select(mask_t, f@W_t, 0) @ fc_w == select(mask_t, f@(W_t@fc_w), 0).
    type_blk = _round_up(hidden + out_dim, 128)
    w_fc = jnp.einsum('tdh,ho->tdo', w_types, fc_w)              # (T, Din, Dout)
    parts = [w_types, w_fc]
    lane_pad_cols = type_blk - hidden - out_dim
    if lane_pad_cols > 0:
        parts.append(jnp.zeros((num_types, in_dim, lane_pad_cols),
                               w_types.dtype))
    w_stack = jnp.concatenate(parts, axis=-1)                    # (T, Din, BLK)
    w_stack = jnp.transpose(w_stack, (1, 0, 2)).reshape(
        in_dim, num_types * type_blk).astype(jnp.bfloat16)
    fcb2d = fc_b.reshape(1, out_dim).astype(jnp.float32)

    # No row padding and no post-slicing: the last grid block is partial.
    # OOB reads (garbage type ids / features) only produce garbage rows whose
    # writes Pallas drops, and the outputs come out at exactly (n, .), so
    # there are no extra HBM passes outside the kernel.
    tmask2d = type_mask.astype(jnp.int32).reshape(n, 1)

    kernel = functools.partial(_magnn_gc_kernel, num_types=num_types,
                               hidden=hidden, out_dim=out_dim,
                               type_blk=type_blk)

    # Tight VMEM cap: double-buffered per-step I/O (lane-padded tiles) plus
    # the resident weights/bias counted once; floor 8 MiB, cap 16 MiB so the
    # kernel never hogs v7x's 64 MiB physical VMEM.
    def _lane_pad(c):
        return _round_up(max(c, 1), 128)
    io_bytes = 2 * tile_n * 4 * (_lane_pad(in_dim) + _lane_pad(1)
                                 + _lane_pad(out_dim) + _lane_pad(hidden))
    w_bytes = in_dim * num_types * type_blk * 2 + _lane_pad(out_dim) * 4
    vmem_limit = int(min(max(2 * (io_bytes + w_bytes), 8 * 2**20), 16 * 2**20))

    h_fc, h = pl.pallas_call(
        kernel,
        out_shape=(jax.ShapeDtypeStruct((n, out_dim), jnp.float32),
                   jax.ShapeDtypeStruct((n, hidden), jnp.float32)),
        grid_spec=pltpu.PrefetchScalarGridSpec(
            num_scalar_prefetch=0,
            grid=(grid,),
            in_specs=[
                pl.BlockSpec((tile_n, 1), lambda i: (i, 0)),         # type ids
                pl.BlockSpec((tile_n, in_dim), lambda i: (i, 0)),    # features
                pl.BlockSpec((in_dim, num_types * type_blk),
                             lambda i: (0, 0)),                      # stacked W
                pl.BlockSpec((1, out_dim), lambda i: (0, 0)),        # fc bias
            ],
            out_specs=[
                pl.BlockSpec((tile_n, out_dim), lambda i: (i, 0)),   # h_fc
                pl.BlockSpec((tile_n, hidden), lambda i: (i, 0)),    # h
            ],
        ),
        compiler_params=pltpu.CompilerParams(
            dimension_semantics=("parallel",),
            vmem_limit_bytes=vmem_limit),
    )(tmask2d, features, w_stack, fcb2d)

    return h_fc, h


def _reference(features, type_mask, w_types, fc_w, fc_b):
    n = features.shape[0]
    hidden = w_types.shape[-1]
    h = jnp.zeros((n, hidden), jnp.float32)
    for t in range(w_types.shape[0]):
        proj = features @ w_types[t]
        h = jnp.where((type_mask == t)[:, None], proj, h)
    return h @ fc_w + fc_b[None, :], h


if __name__ == "__main__":
    # Module hyperparameters (small, consistent with __init__ signature):
    #   num_metapaths_list = [2, 2]  -> 2 node types (2 ctr_ntype layers)
    #   in_dim = 16, num_heads = 4   -> hidden = in_dim * num_heads = 64
    #   out_dim = 32
    num_types = 2
    in_dim, num_heads, out_dim = 16, 4, 32
    hidden = in_dim * num_heads
    num_nodes = 500        # not a multiple of the tile -> exercises partial blocks

    key = jax.random.PRNGKey(0)
    k_feat, k_mask, k_w, k_fcw, k_fcb = jax.random.split(key, 5)

    features = jax.random.normal(k_feat, (num_nodes, in_dim), jnp.float32)
    type_mask = jax.random.randint(k_mask, (num_nodes,), 0, num_types, jnp.int32)

    # Deterministic parameter init (xavier-normal-like, gain=1.414 for fc).
    w_types = jax.random.normal(k_w, (num_types, in_dim, hidden), jnp.float32)
    w_types = w_types * jnp.sqrt(2.0 / (in_dim + hidden))
    fc_w = jax.random.normal(k_fcw, (hidden, out_dim), jnp.float32)
    fc_w = fc_w * (1.414 * jnp.sqrt(2.0 / (hidden + out_dim)))
    fc_b = 0.01 * jax.random.normal(k_fcb, (out_dim,), jnp.float32)

    h_fc, h = magnn_gc_forward(features, type_mask, w_types, fc_w, fc_b)
    jax.block_until_ready((h_fc, h))

    ref_fc, ref_h = _reference(features, type_mask, w_types, fc_w, fc_b)
    assert h.shape == ref_h.shape and h_fc.shape == ref_fc.shape
    # bf16 MXU inputs with f32 accumulation -> loosened tolerance vs f32 ref.
    assert jnp.allclose(h, ref_h, atol=5e-2, rtol=5e-2)
    assert jnp.allclose(h_fc, ref_fc, atol=5e-2, rtol=5e-2)

    print("KERNEL_OK")
</pallas_src>

<mosaic_0001>
module attributes {stable_mosaic.version = 11 : i64} {
  func.func @_magnn_gc_kernel(%arg0: i32, %arg1: memref<128x1xi32, #tpu.memory_space<vmem>>, %arg2: memref<128x16xf32, #tpu.memory_space<vmem>>, %arg3: memref<16x256xbf16, #tpu.memory_space<vmem>>, %arg4: memref<1x32xf32, #tpu.memory_space<vmem>>, %arg5: memref<128x32xf32, #tpu.memory_space<vmem>>, %arg6: memref<128x64xf32, #tpu.memory_space<vmem>>) attributes {dimension_semantics = [#tpu.dimension_semantics<parallel>], iteration_bounds = array<i64: 4>, scalar_prefetch = 0 : i64, scratch_operands = 0 : i64, tpu.core_type = #tpu.core_type<tc>, window_params = [{transform_indices = @transform_0, window_bounds = array<i64: 128, 1>}, {transform_indices = @transform_1, window_bounds = array<i64: 128, 16>}, {pipeline_mode = #tpu.pipeline_mode<synchronous>, transform_indices = @transform_2, window_bounds = array<i64: 16, 256>}, {pipeline_mode = #tpu.pipeline_mode<synchronous>, transform_indices = @transform_3, window_bounds = array<i64: 1, 32>}, {transform_indices = @transform_4, window_bounds = array<i64: 128, 32>}, {transform_indices = @transform_5, window_bounds = array<i64: 128, 64>}]} {
    %c0 = arith.constant 0 : index
    %c0_0 = arith.constant 0 : index
    %0 = vector.load %arg2[%c0, %c0_0] : memref<128x16xf32, #tpu.memory_space<vmem>>, vector<128x16xf32>
    %1 = arith.truncf %0 : vector<128x16xf32> to vector<128x16xbf16>
    %c0_1 = arith.constant 0 : index
    %c0_2 = arith.constant 0 : index
    %2 = vector.load %arg3[%c0_1, %c0_2] : memref<16x256xbf16, #tpu.memory_space<vmem>>, vector<16x256xbf16>
    %cst = arith.constant dense<0.000000e+00> : vector<128x256xf32>
    %3 = tpu.matmul %1, %2, %cst {dimension_numbers = #tpu.dot_dimension_numbers<[1], [0], [0], [1], [0, 0, 1, 1], [], []>} : vector<128x16xbf16>, vector<16x256xbf16>, vector<128x256xf32> -> vector<128x256xf32>
    %c0_3 = arith.constant 0 : index
    %c0_4 = arith.constant 0 : index
    %4 = vector.load %arg1[%c0_3, %c0_4] : memref<128x1xi32, #tpu.memory_space<vmem>>, vector<128x1xi32>
    %5 = vector.shape_cast %4 : vector<128x1xi32> to vector<128x1xi32>
    %6 = vector.broadcast %5 : vector<128x1xi32> to vector<128x128xi32>
    %cst_5 = arith.constant 0.000000e+00 : f32
    %7 = vector.broadcast %cst_5 : f32 to vector<128x128xf32>
    %c0_i32 = arith.constant 0 : i32
    %8 = vector.broadcast %c0_i32 : i32 to vector<128x128xi32>
    %9 = arith.cmpi eq, %6, %8 : vector<128x128xi32>
    %10 = vector.extract_strided_slice %3 {offsets = [0, 0], sizes = [128, 128], strides = [1, 1]} : vector<128x256xf32> to vector<128x128xf32>
    %11 = arith.select %9, %10, %7 : vector<128x128xi1>, vector<128x128xf32>
    %c1_i32 = arith.constant 1 : i32
    %12 = vector.broadcast %c1_i32 : i32 to vector<128x128xi32>
    %13 = arith.cmpi eq, %6, %12 : vector<128x128xi32>
    %14 = vector.extract_strided_slice %3 {offsets = [0, 128], sizes = [128, 128], strides = [1, 1]} : vector<128x256xf32> to vector<128x128xf32>
    %15 = arith.select %13, %14, %11 : vector<128x128xi1>, vector<128x128xf32>
    %16 = vector.extract_strided_slice %15 {offsets = [0, 0], sizes = [128, 64], strides = [1, 1]} : vector<128x128xf32> to vector<128x64xf32>
    %c0_6 = arith.constant 0 : index
    %c0_7 = arith.constant 0 : index
    %17 = vector.load %arg6[%c0_6, %c0_7] : memref<128x64xf32, #tpu.memory_space<vmem>>, vector<128x64xf32>
    tpu.vector_store %arg6[%c0_6, %c0_7], %16 {strides = array<i32>} : memref<128x64xf32, #tpu.memory_space<vmem>>, vector<128x64xf32>,
    %18 = vector.extract_strided_slice %15 {offsets = [0, 64], sizes = [128, 32], strides = [1, 1]} : vector<128x128xf32> to vector<128x32xf32>
    %c0_8 = arith.constant 0 : index
    %c0_9 = arith.constant 0 : index
    %19 = vector.load %arg4[%c0_8, %c0_9] : memref<1x32xf32, #tpu.memory_space<vmem>>, vector<1x32xf32>
    %20 = vector.broadcast %19 : vector<1x32xf32> to vector<128x32xf32>
    %21 = arith.addf %18, %20 : vector<128x32xf32>
    %c0_10 = arith.constant 0 : index
    %c0_11 = arith.constant 0 : index
    %22 = vector.load %arg5[%c0_10, %c0_11] : memref<128x32xf32, #tpu.memory_space<vmem>>, vector<128x32xf32>
    tpu.vector_store %arg5[%c0_10, %c0_11], %21 {strides = array<i32>} : memref<128x32xf32, #tpu.memory_space<vmem>>, vector<128x32xf32>,
    return
  }
  func.func @transform_0(%arg0: i32) -> (i32, i32) {
    %c0_i32 = arith.constant 0 : i32
    %c0_i32_0 = arith.constant 0 : i32
    return %arg0, %c0_i32 : i32, i32
  }
  func.func @transform_1(%arg0: i32) -> (i32, i32) {
    %c0_i32 = arith.constant 0 : i32
    %c0_i32_0 = arith.constant 0 : i32
    return %arg0, %c0_i32 : i32, i32
  }
  func.func @transform_2(%arg0: i32) -> (i32, i32) {
    %c0_i32 = arith.constant 0 : i32
    %c0_i32_0 = arith.constant 0 : i32
    %c0_i32_1 = arith.constant 0 : i32
    return %c0_i32, %c0_i32_0 : i32, i32
  }
  func.func @transform_3(%arg0: i32) -> (i32, i32) {
    %c0_i32 = arith.constant 0 : i32
    %c0_i32_0 = arith.constant 0 : i32
    %c0_i32_1 = arith.constant 0 : i32
    return %c0_i32, %c0_i32_0 : i32, i32
  }
  func.func @transform_4(%arg0: i32) -> (i32, i32) {
    %c0_i32 = arith.constant 0 : i32
    %c0_i32_0 = arith.constant 0 : i32
    return %arg0, %c0_i32 : i32, i32
  }
  func.func @transform_5(%arg0: i32) -> (i32, i32) {
    %c0_i32 = arith.constant 0 : i32
    %c0_i32_0 = arith.constant 0 : i32
    return %arg0, %c0_i32 : i32, i32
  }
}

</mosaic_0001>

<bundles_post_ra>
// kernel: tpu_custom_call.1
= control target key start
LH: loop header
LB: loop body
LE: loop exit
PB: predicated region body
PF: predicated region fallthrough
CT: control target
= control target key end

     0   :  { %s1669_s18 = smov 0   ;;  %s1671_s19 = smov 0   ;;  %s2099_s0 = inlined_call_operand.vmem [shape: s32[500,1], index: 0, kind: input, shape index: {}]   ;;  %s2100_s1 = inlined_call_operand.vmem [shape: f32[500,16], index: 1, kind: input, shape index: {}]   ;;  %s2101_s2 = inlined_call_operand.vmem [shape: bf16[16,256], index: 2, kind: input, shape index: {}]   ;;  %s2102_s3 = inlined_call_operand.vmem [shape: f32[1,32], index: 3, kind: input, shape index: {}]   ;;  %s2103_s4 = inlined_call_operand.vmem [shape: f32[500,32], index: 4, kind: output, shape index: {0}]   ;;  %s2104_s5 = inlined_call_operand.vmem [shape: f32[500,64], index: 5, kind: output, shape index: {1}]  }
   0x1   :  { %s1673_s20 = smov 0  }
   0x2 LB: > { %s1682_s21 = sadd.s32 4294967295, %s1571_s20   ;;  %s1684_s22 = sadd.s32 1, %s1571_s20   ;;  %s1571_s20 = sphi %s1673_s20, %s2114_s20   ;;  %s1567_s19 = sphi %s1671_s19, %s2113_s19   ;;  %s1563_s18 = sphi %s1669_s18, %s2112_s18  }
   0x3   : > { %s114_s23 = ssub.s32 %s1571_s20, %s1684_s22  ;;  %s117_s24 = sadd.s32 1, %s1567_s19 }
   0x4   : > { %p115_p0 = scmp.eq.s32.totalorder %s114_s23, 0  ;;  %p127_p1 = scmp.ne.s32.totalorder %s1567_s19, %s1563_s18 }
   0x5   : > { %p128_p2 = scmp.eq.s32.totalorder %s1682_s21, 3  ;;  %p1268_p3 = scmp.ge.s32.totalorder %s1571_s20, 1 }
   0x6   : > { %s1692_s25 = scalar_select %p115_p0, %s1567_s19, %s117_s24  }
   0x7   : > { %p1694_p4 = por %p128_p2, %p127_p1  ;;  %p218_p5 = scmp.lt.s32.totalorder %s1571_s20, 5 }
   0x9   : > { %p219_p6 = pnand %p1268_p3, %p218_p5 }
   0xa   : > { %v1482_v0 = vld [vmem:[%s2101_s2 + $0x4] ss:$8 sps:$4 sm:$0xff] (!%p219_p6)   ;;  %s1702_s29 = sshll.u32 (!%p219_p6), %s1682_s21, 4  ;;  %v1484_v1 = vld [vmem:[%s2101_s2] ss:$8 sps:$4 sm:$0xff] (!%p219_p6)   ;;  %v1637_v2 = vmov (!%p219_p6), 0  }
   0xb   : > { %222 = sbr.rel (%p219_p6) target bundleno = 492 (0x1ec), region = 36  ;;  %394 = vmatprep.mubr.bf16.mxu0 (!%p219_p6), %v1637_v2  ;;  %434 = vmatprep.mubr.bf16.mxu1 (!%p219_p6), %v1637_v2  ;;  %p267_p7 = scmp.lt.s32.totalorder (!%p219_p6), %s1702_s29, 62  ;;  %vm337_vm0 = vcmask (!%p219_p6), 130048   ;;  %v1285_v43 = vld [vmem:[%s2102_s3] ss:$0 sm:$0xff] (!%p219_p6)  ;;  %vm603_vm2 = vcmask (!%p219_p6), 523264  }
   0xc   : > { %362 = vmatprep.subr.bf16.mxu0 (!%p219_p6), %v1482_v0  ;;  %1324 = vmatprep.subr.bf16.mxu1 (!%p219_p6), %v1482_v0  ;;  %s1638_s17 = smov (!%p219_p6), 64   ;;  %s253_s20 = sand.u32 (!%p219_p6), 1, %s1563_s18  }
   0xd   : > { %363 = vmatpush1.bf16.msra.mxu0 (!%p219_p6), %v1484_v1  ;;  %1325 = vmatpush1.bf16.msra.mxu1 (!%p219_p6), %v1484_v1  ;;  %s1780_s23 = sshll.u32 (!%p219_p6), %s253_s20, 7 }
   0xe   : > { %1480 = vset.pattern.permute.xlu0 (!%p219_p6), %v1637_v2  ;;  %1481 = vset.pattern.permute.xlu1 (!%p219_p6), %v1637_v2  ;;  %s1785_s18 = scalar_lea.vmem (!%p219_p6), [#allocation3], %s1780_s23   ;;  %s1875_s24 = scalar_lea.vmem (!%p219_p6), [#allocation2], %s1780_s23  }
  0x12   : > { %s268_s7 = scalar_select %p267_p7, %s1702_s29, 62 }
  0x13   : > { %s738_s27 = ssub.s32 (%p1694_p4), 63, %s1702_s29  ;;  %s1318_s28 = sshll.u32 (%p1694_p4), %s1682_s21, 7 }
  0x14   : > { %s1272_s8 = sshll.u32 %s268_s7, 3  ;;  %p739_p8 = scmp.lt.s32.totalorder (%p1694_p4), %s738_s27, 16 }
  0x15   : > { %s1712_s11 = scalar_lea.vmem %s2100_s1, %s1272_s8  ;;  %s1721_s14 = scalar_lea.vmem %s2099_s0, %s1272_s8 }
  0x16   : > { %v301_v3 = vld [vmem:[%s1712_s11] sm:$0xff]  ;;  %v302_v4 = vld [vmem:[%s1712_s11 + $0x8] sm:$0xff]  ;;  %v303_v9 = vld [vmem:[%s1712_s11 + $0x10] sm:$0xff]  ;;  %s1916_s7 = scalar_lea.vmem (%p1694_p4), %s2103_s4, %s1318_s28  }
  0x17   : > { %v309_v5 = vld [vmem:[%s1712_s11 + $0x40] sm:$0xff]  ;;  %v317_v6 = vpack.c.bf16 %v302_v4, %v301_v3  ;;  %v310_v7 = vld [vmem:[%s1712_s11 + $0x48] sm:$0xff]  ;;  %v304_v10 = vld [vmem:[%s1712_s11 + $0x18] sm:$0xff] }
  0x18   : > { %v321_v8 = vpack.c.bf16 %v310_v7, %v309_v5  ;;  %v311_v11 = vld [vmem:[%s1712_s11 + $0x50] sm:$0xff]  ;;  %v312_v12 = vld [vmem:[%s1712_s11 + $0x58] sm:$0xff]  ;;  %v475_v13 = vld [vmem:[%s1721_s14] sm:$0xff]  ;;  %v318_v14 = vpack.c.bf16 %v304_v10, %v303_v9 }
  0x19   : > { %1277 = vmatmul.mubr.msk.bf16.vlgmr.msra.gmra.mrb[0].mxu0 %vm337_vm0, %v317_v6  ;;  %492 = vperm.xlu0 %1480, %v475_v13   ;;  %v476_v15 = vld [vmem:[%s1721_s14 + $0x8] sm:$0xff]  ;;  %v477_v16 = vld [vmem:[%s1721_s14 + $0x10] sm:$0xff]  ;;  %v322_v17 = vpack.c.bf16 %v312_v12, %v311_v11  ;;  %v478_v18 = vld [vmem:[%s1721_s14 + $0x18] sm:$0xff] }
  0x1a   : > { %1281 = vmatmul.mubr.msk.bf16.vlgmr.msra.gmra.mrb[0].mxu1 %vm337_vm0, %v321_v8  ;;  %404 = vmatprep.mubr.bf16.mxu0 %v1637_v2  ;;  %v479_v19 = vld [vmem:[%s1721_s14 + $0x20] sm:$0xff]  ;;  %v306_v21 = vld [vmem:[%s1712_s11 + $0x28] sm:$0xff]  ;;  %v481_v26 = vld [vmem:[%s1721_s14 + $0x30] sm:$0xff] }
  0x1b   : > { %444 = vmatprep.mubr.bf16.mxu1 %v1637_v2  ;;  %498 = vperm.xlu1 %1481, %v477_v16   ;;  %v305_v20 = vld [vmem:[%s1712_s11 + $0x20] sm:$0xff]  ;;  %v314_v23 = vld [vmem:[%s1712_s11 + $0x68] sm:$0xff]  ;;  %v482_v28 = vld [vmem:[%s1721_s14 + $0x38] sm:$0xff] }
  0x1c   : > { %v313_v22 = vld [vmem:[%s1712_s11 + $0x60] sm:$0xff]  ;;  %v480_v24 = vld [vmem:[%s1721_s14 + $0x28] sm:$0xff]  ;;  %v319_v25 = vpack.c.bf16 %v306_v21, %v305_v20  ;;  %v307_v30 = vld [vmem:[%s1712_s11 + $0x30] sm:$0xff] }
  0x1d   : > { %495 = vperm.xlu0 %1480, %v476_v15   ;;  %v323_v27 = vpack.c.bf16 %v314_v23, %v313_v22  ;;  %v483_v29 = vld [vmem:[%s1721_s14 + $0x40] sm:$0xff]  ;;  %v308_v31 = vld [vmem:[%s1712_s11 + $0x38] sm:$0xff]  ;;  %v315_v32 = vld [vmem:[%s1712_s11 + $0x70] sm:$0xff] }
  0x1e   : > { %v316_v33 = vld [vmem:[%s1712_s11 + $0x78] sm:$0xff]  ;;  %v484_v34 = vld [vmem:[%s1721_s14 + $0x48] sm:$0xff]  ;;  %v320_v35 = vpack.c.bf16 %v308_v31, %v307_v30  ;;  %v485_v36 = vld [vmem:[%s1721_s14 + $0x50] sm:$0xff] }
  0x1f   : > { %501 = vperm.xlu1 %1481, %v478_v18   ;;  %v324_v37 = vpack.c.bf16 %v316_v33, %v315_v32  ;;  %v486_v38 = vld [vmem:[%s1721_s14 + $0x58] sm:$0xff]  ;;  %v487_v39 = vld [vmem:[%s1721_s14 + $0x60] sm:$0xff]  ;;  %v488_v40 = vld [vmem:[%s1721_s14 + $0x68] sm:$0xff] }
  0x20   : > { %v489_v41 = vld [vmem:[%s1721_s14 + $0x70] sm:$0xff]  ;;  %v490_v42 = vld [vmem:[%s1721_s14 + $0x78] sm:$0xff] }
  0x21   : > { %1278 = vmatmul.mubr.msk.bf16.gmra.mrb[4].mxu0 %vm337_vm0, %v318_v14  ;;  %504 = vperm.xlu0 %1480, %v479_v19  }
  0x22   : > { %1282 = vmatmul.mubr.msk.bf16.gmra.mrb[4].mxu1 %vm337_vm0, %v322_v17  ;;  %414 = vmatprep.mubr.bf16.mxu0 %v1637_v2 }
  0x23   : > { %454 = vmatprep.mubr.bf16.mxu1 %v1637_v2  ;;  %507 = vperm.xlu1 %1481, %v480_v24  }
  0x25   : > { %510 = vperm.xlu0 %1480, %v481_v26  }
  0x27   : > { %513 = vperm.xlu1 %1481, %v482_v28  }
  0x29   : > { %1279 = vmatmul.mubr.msk.bf16.gmra.mrb[8].mxu0 %vm337_vm0, %v319_v25  ;;  %516 = vperm.xlu0 %1480, %v483_v29  }
  0x2a   : > { %1283 = vmatmul.mubr.msk.bf16.gmra.mrb[8].mxu1 %vm337_vm0, %v323_v27  ;;  %424 = vmatprep.mubr.bf16.mxu0 %v1637_v2 }
  0x2b   : > { %464 = vmatprep.mubr.bf16.mxu1 %v1637_v2  ;;  %519 = vperm.xlu1 %1481, %v484_v34  }
  0x2d   : > { %522 = vperm.xlu0 %1480, %v485_v36  }
  0x2f   : > { %525 = vperm.xlu1 %1481, %v486_v38  }
  0x31   : > { %1280 = vmatmul.mubr.msk.bf16.gmra.mrb[12].mxu0 %vm337_vm0, %v320_v35  ;;  %528 = vperm.xlu0 %1480, %v487_v39  }
  0x32   : > { %1284 = vmatmul.mubr.msk.bf16.gmra.mrb[12].mxu1 %vm337_vm0, %v324_v37 }
  0x33   : > { %531 = vperm.xlu1 %1481, %v488_v40  }
  0x35   : > { %534 = vperm.xlu0 %1480, %v489_v41  }
  0x37   : > { %537 = vperm.xlu1 %1481, %v490_v42  }
  0x39   : > { %626 = vrot.lane.b32.xlu0 %v1285_v43, %s1638_s17 }
  0x98   : > { %v493_v44 = vpop.permute.xlu0 %492 }
  0x99   : > { %vm539_vm1 = vcmp.eq.s32.totalorder %v493_v44, 0  ;;  %vm571_vm3 = vcmp.eq.s32.totalorder %v493_v44, 1 }
  0x9a   : > { %v499_v48 = vpop.permute.xlu1 %498 }
  0x9b   : > { %vm573_vm10 = vcmp.eq.s32.totalorder %v499_v48, 1  ;;  %vm541_vm11 = vcmp.eq.s32.totalorder %v499_v48, 0 }
  0x9c   : > { %v496_v45 = vpop.permute.xlu0 %495 }
  0x9d   : > { %vm572_vm4 = vcmp.eq.s32.totalorder %v496_v45, 1  ;;  %vm540_vm7 = vcmp.eq.s32.totalorder %v496_v45, 0 }
  0x9e   : > { %v1767_v50 = vpop.permute.xlu1 %501 }
  0x9f   : > { %vm574_vm12 = vcmp.eq.s32.totalorder %v1767_v50, 1  ;;  %vm542_vm15 = vcmp.eq.s32.totalorder %v1767_v50, 0 }
  0xa0   : > { %v1763_v46 = vpop.permute.xlu0 %504 }
  0xa2   : > { %v1771_v52 = vpop.permute.xlu1 %507 }
  0xa4   : > { %v1765_v47 = vpop.permute.xlu0 %510 }
  0xa6   : > { %v1775_v54 = vpop.permute.xlu1 %513 }
  0xa8   : > { %v517_v49 = vpop.permute.xlu0 %516 }
  0xa9   : > { %vm547_vm5 = vcmp.eq.s32.totalorder %v517_v49, 0  ;;  %vm579_vm6 = vcmp.eq.s32.totalorder %v517_v49, 1 }
  0xaa   : > { %v520_v56 = vpop.permute.xlu1 %519 }
  0xab   : > { %vm548_vm8 = vcmp.eq.s32.totalorder %v520_v56, 0  ;;  %vm580_vm9 = vcmp.eq.s32.totalorder %v520_v56, 1 }
  0xac   : > { %v1769_v51 = vpop.permute.xlu0 %522 }
  0xad   : > { %vm549_vm13 = vcmp.eq.s32.totalorder %v1769_v51, 0  ;;  %vm581_vm14 = vcmp.eq.s32.totalorder %v1769_v51, 1 }
  0xae   : > { %v526_v13 = vpop.permute.xlu1 %525 }
  0xaf   : > { %vm550_vm0 = vcmp.eq.s32.totalorder %v526_v13, 0 }
  0xb0   : > { %v1773_v53 = vpop.permute.xlu0 %528 }
  0xb2   : > { %v532_v34 = vpop.permute.xlu1 %531 }
  0xb4   : > { %v1778_v55 = vpop.permute.xlu0 %534 }
  0xb8   : > { %v1782_v58 = vpop.permute.xlu0 %626 }
  0xec   : > { %v396_v57 = vpop.f32.mrb[0].mxu0 }
  0xed   : > { %v555_v59 = vsel %vm539_vm1, %v396_v57, 0.0  ;;  %v436_v60 = vpop.f32.mrb[0].mxu1  ;;  %v398_v61 = vpop.f32.mrb[1].mxu0  ;;  %vm582_vm1 = vcmp.eq.s32.totalorder %v526_v13, 1 }
  0xee   : > { %v563_v62 = vsel %vm547_vm5, %v436_v60, 0.0  ;;  %v587_v63 = vsel %vm571_vm3, %v398_v61, %v555_v59  ;;  %v438_v0 = vpop.f32.mrb[1].mxu1  ;;  %v400_v1 = vpop.f32.mrb[2].mxu0  ;;  %vm575_vm3 = vcmp.eq.s32.totalorder %v1763_v46, 1  ;;  %vm576_vm5 = vcmp.eq.s32.totalorder %v1771_v52, 1 }
  0xef   : > { %604 = vst.msk [vmem:[%s1785_s18] sm:$0xff] %vm603_vm2, %v587_v63  ;;  %v595_v2 = vsel %vm579_vm6, %v438_v0, %v563_v62  ;;  %v556_v3 = vsel %vm540_vm7, %v400_v1, 0.0  ;;  %v440_v4 = vpop.f32.mrb[2].mxu1  ;;  %v402_v5 = vpop.f32.mrb[3].mxu0  ;;  %v629_v6 = vadd.f32 %v1782_v58, %v587_v63  ;;  %vm551_vm6 = vcmp.eq.s32.totalorder %v1773_v53, 0 }
  0xf0   : > { %612 = vst.msk [vmem:[%s1785_s18 + $0x40] sm:$0xff] %vm603_vm2, %v595_v2  ;;  %v564_v7 = vsel %vm548_vm8, %v440_v4, 0.0  ;;  %v588_v8 = vsel %vm572_vm4, %v402_v5, %v556_v3  ;;  %v442_v9 = vpop.f32.mrb[3].mxu1  ;;  %v637_v12 = vadd.f32 %v1782_v58, %v595_v2  ;;  %vm543_vm4 = vcmp.eq.s32.totalorder %v1763_v46, 0  ;;  %v538_v60 = vpop.permute.xlu1 %537 }
  0xf1   : > { %605 = vst.msk [vmem:[%s1785_s18 + $0x8] sm:$0xff] %vm603_vm2, %v588_v8  ;;  %v630_v10 = vadd.f32 %v1782_v58, %v588_v8  ;;  %v596_v11 = vsel %vm580_vm9, %v442_v9, %v564_v7  ;;  %661 = vrot.lane.b32.xlu1 %v629_v6, %s1638_s17  ;;  %vm583_vm7 = vcmp.eq.s32.totalorder %v1773_v53, 1  ;;  %vm544_vm8 = vcmp.eq.s32.totalorder %v1771_v52, 0 }
  0xf2   : > { %613 = vst.msk [vmem:[%s1785_s18 + $0x48] sm:$0xff] %vm603_vm2, %v596_v11  ;;  %v638_v15 = vadd.f32 %v1782_v58, %v596_v11  ;;  %vm552_vm9 = vcmp.eq.s32.totalorder %v532_v34, 0 }
  0xf3   : > { %663 = vrot.lane.b32.xlu0 %v630_v10, %s1638_s17 }
  0xf4   : > { %v406_v14 = vpop.f32.mrb[4].mxu0 }
  0xf5   : > { %v557_v16 = vsel %vm541_vm11, %v406_v14, 0.0  ;;  %v446_v17 = vpop.f32.mrb[4].mxu1  ;;  %v408_v18 = vpop.f32.mrb[5].mxu0  ;;  %677 = vrot.lane.b32.xlu1 %v637_v12, %s1638_s17  ;;  %vm577_vm11 = vcmp.eq.s32.totalorder %v1765_v47, 1 }
  0xf6   : > { %v565_v19 = vsel %vm549_vm13, %v446_v17, 0.0  ;;  %v589_v20 = vsel %vm573_vm10, %v408_v18, %v557_v16  ;;  %v448_v21 = vpop.f32.mrb[5].mxu1  ;;  %v410_v22 = vpop.f32.mrb[6].mxu0  ;;  %vm584_vm10 = vcmp.eq.s32.totalorder %v532_v34, 1  ;;  %vm578_vm13 = vcmp.eq.s32.totalorder %v1775_v54, 1 }
  0xf7   : > { %606 = vst.msk [vmem:[%s1785_s18 + $0x10] sm:$0xff] %vm603_vm2, %v589_v20  ;;  %v631_v23 = vadd.f32 %v1782_v58, %v589_v20  ;;  %v597_v24 = vsel %vm581_vm14, %v448_v21, %v565_v19  ;;  %v558_v25 = vsel %vm542_vm15, %v410_v22, 0.0  ;;  %v450_v26 = vpop.f32.mrb[6].mxu1  ;;  %v412_v27 = vpop.f32.mrb[7].mxu0  ;;  %679 = vrot.lane.b32.xlu0 %v638_v15, %s1638_s17  ;;  %vm553_vm14 = vcmp.eq.s32.totalorder %v1778_v55, 0 }
  0xf8   : > { %614 = vst.msk [vmem:[%s1785_s18 + $0x50] sm:$0xff] %vm603_vm2, %v597_v24  ;;  %v566_v28 = vsel %vm550_vm0, %v450_v26, 0.0  ;;  %v590_v29 = vsel %vm574_vm12, %v412_v27, %v558_v25  ;;  %v452_v30 = vpop.f32.mrb[7].mxu1  ;;  %v639_v33 = vadd.f32 %v1782_v58, %v597_v24  ;;  %vm545_vm12 = vcmp.eq.s32.totalorder %v1765_v47, 0 }
  0xf9   : > { %607 = vst.msk [vmem:[%s1785_s18 + $0x18] sm:$0xff] %vm603_vm2, %v590_v29  ;;  %v632_v31 = vadd.f32 %v1782_v58, %v590_v29  ;;  %v598_v32 = vsel %vm582_vm1, %v452_v30, %v566_v28  ;;  %665 = vrot.lane.b32.xlu1 %v631_v23, %s1638_s17  ;;  %vm585_vm15 = vcmp.eq.s32.totalorder %v1778_v55, 1  ;;  %vm546_vm0 = vcmp.eq.s32.totalorder %v1775_v54, 0 }
  0xfa   : > { %615 = vst.msk [vmem:[%s1785_s18 + $0x58] sm:$0xff] %vm603_vm2, %v598_v32  ;;  %v640_v36 = vadd.f32 %v1782_v58, %v598_v32  ;;  %vm554_vm1 = vcmp.eq.s32.totalorder %v538_v60, 0 }
  0xfb   : > { %667 = vrot.lane.b32.xlu0 %v632_v31, %s1638_s17 }
  0xfc   : > { %v416_v35 = vpop.f32.mrb[8].mxu0 }
  0xfd   : > { %v559_v37 = vsel %vm543_vm4, %v416_v35, 0.0  ;;  %v456_v38 = vpop.f32.mrb[8].mxu1  ;;  %v418_v39 = vpop.f32.mrb[9].mxu0  ;;  %681 = vrot.lane.b32.xlu1 %v639_v33, %s1638_s17  ;;  %vm709_vm4 = vcmask 261120  }
  0xfe   : > { %v567_v40 = vsel %vm551_vm6, %v456_v38, 0.0  ;;  %v591_v41 = vsel %vm575_vm3, %v418_v39, %v559_v37  ;;  %v458_v42 = vpop.f32.mrb[9].mxu1  ;;  %v420_v43 = vpop.f32.mrb[10].mxu0  ;;  %vm586_vm3 = vcmp.eq.s32.totalorder %v538_v60, 1 }
  0xff   : > { %608 = vst.msk [vmem:[%s1785_s18 + $0x20] sm:$0xff] %vm603_vm2, %v591_v41  ;;  %v633_v44 = vadd.f32 %v1782_v58, %v591_v41  ;;  %v599_v45 = vsel %vm583_vm7, %v458_v42, %v567_v40  ;;  %v560_v46 = vsel %vm544_vm8, %v420_v43, 0.0  ;;  %v460_v48 = vpop.f32.mrb[10].mxu1  ;;  %v422_v49 = vpop.f32.mrb[11].mxu0  ;;  %683 = vrot.lane.b32.xlu0 %v640_v36, %s1638_s17 }
 0x100   : > { %616 = vst.msk [vmem:[%s1785_s18 + $0x60] sm:$0xff] %vm603_vm2, %v599_v45  ;;  %v568_v50 = vsel %vm552_vm9, %v460_v48, 0.0  ;;  %v592_v51 = vsel %vm576_vm5, %v422_v49, %v560_v46  ;;  %v462_v53 = vpop.f32.mrb[11].mxu1  ;;  %v641_v59 = vadd.f32 %v1782_v58, %v599_v45 }
 0x101   : > { %609 = vst.msk [vmem:[%s1785_s18 + $0x28] sm:$0xff] %vm603_vm2, %v592_v51  ;;  %v634_v56 = vadd.f32 %v1782_v58, %v592_v51  ;;  %v600_v57 = vsel %vm584_vm10, %v462_v53, %v568_v50  ;;  %669 = vrot.lane.b32.xlu1 %v633_v44, %s1638_s17 }
 0x102   : > { %617 = vst.msk [vmem:[%s1785_s18 + $0x68] sm:$0xff] %vm603_vm2, %v600_v57  ;;  %v642_v61 = vadd.f32 %v1782_v58, %v600_v57 }
 0x103   : > { %671 = vrot.lane.b32.xlu0 %v634_v56, %s1638_s17 }
 0x104   : > { %v426_v52 = vpop.f32.mrb[12].mxu0 }
 0x105   : > { %v561_v62 = vsel %vm545_vm12, %v426_v52, 0.0  ;;  %v466_v63 = vpop.f32.mrb[12].mxu1  ;;  %v428_v0 = vpop.f32.mrb[13].mxu0  ;;  %685 = vrot.lane.b32.xlu1 %v641_v59, %s1638_s17 }
 0x106   : > { %v569_v1 = vsel %vm553_vm14, %v466_v63, 0.0  ;;  %v593_v2 = vsel %vm577_vm11, %v428_v0, %v561_v62  ;;  %v468_v3 = vpop.f32.mrb[13].mxu1  ;;  %v430_v4 = vpop.f32.mrb[14].mxu0 }
 0x107   : > { %610 = vst.msk [vmem:[%s1785_s18 + $0x30] sm:$0xff] %vm603_vm2, %v593_v2  ;;  %v635_v47 = vadd.f32 %v1782_v58, %v593_v2  ;;  %v601_v5 = vsel %vm585_vm15, %v468_v3, %v569_v1  ;;  %v562_v6 = vsel %vm546_vm0, %v430_v4, 0.0  ;;  %v470_v7 = vpop.f32.mrb[14].mxu1  ;;  %v432_v8 = vpop.f32.mrb[15].mxu0  ;;  %687 = vrot.lane.b32.xlu0 %v642_v61, %s1638_s17 }
 0x108   : > { %618 = vst.msk [vmem:[%s1785_s18 + $0x70] sm:$0xff] %vm603_vm2, %v601_v5  ;;  %v570_v55 = vsel %vm554_vm1, %v470_v7, 0.0  ;;  %v594_v9 = vsel %vm578_vm13, %v432_v8, %v562_v6  ;;  %v472_v10 = vpop.f32.mrb[15].mxu1  ;;  %v643_v13 = vadd.f32 %v1782_v58, %v601_v5 }
 0x109   : > { %611 = vst.msk [vmem:[%s1785_s18 + $0x38] sm:$0xff] %vm603_vm2, %v594_v9  ;;  %v636_v11 = vadd.f32 %v1782_v58, %v594_v9  ;;  %v602_v12 = vsel %vm586_vm3, %v472_v10, %v570_v55  ;;  %673 = vrot.lane.b32.xlu1 %v635_v47, %s1638_s17 }
 0x10a   : > { %619 = vst.msk [vmem:[%s1785_s18 + $0x78] sm:$0xff] %vm603_vm2, %v602_v12  ;;  %v644_v14 = vadd.f32 %v1782_v58, %v602_v12 }
 0x10b   : > { %675 = vrot.lane.b32.xlu0 %v636_v11, %s1638_s17 }
 0x10d   : > { %689 = vrot.lane.b32.xlu1 %v643_v13, %s1638_s17 }
 0x10f   : > { %691 = vrot.lane.b32.xlu0 %v644_v14, %s1638_s17 }
 0x163   : > { %v662_v54 = vpop.permute.xlu1 %661 }
 0x164   : > { %710 = vst.msk [vmem:[%s1875_s24] sm:$0xff] %vm709_vm4, %v662_v54 }
 0x165   : > { %v664_v58 = vpop.permute.xlu0 %663 }
 0x166   : > { %711 = vst.msk [vmem:[%s1875_s24 + $0x8] sm:$0xff] %vm709_vm4, %v664_v58 }
 0x167   : > { %v678_v15 = vpop.permute.xlu1 %677 }
 0x168   : > { %718 = vst.msk [vmem:[%s1875_s24 + $0x40] sm:$0xff] %vm709_vm4, %v678_v15 }
 0x169   : > { %v680_v16 = vpop.permute.xlu0 %679 }
 0x16a   : > { %719 = vst.msk [vmem:[%s1875_s24 + $0x48] sm:$0xff] %vm709_vm4, %v680_v16 }
 0x16b   : > { %v666_v17 = vpop.permute.xlu1 %665 }
 0x16c   : > { %712 = vst.msk [vmem:[%s1875_s24 + $0x10] sm:$0xff] %vm709_vm4, %v666_v17 }
 0x16d   : > { %v668_v18 = vpop.permute.xlu0 %667 }
 0x16e   : > { %713 = vst.msk [vmem:[%s1875_s24 + $0x18] sm:$0xff] %vm709_vm4, %v668_v18 }
 0x16f   : > { %v682_v19 = vpop.permute.xlu1 %681 }
 0x170   : > { %720 = vst.msk [vmem:[%s1875_s24 + $0x50] sm:$0xff] %vm709_vm4, %v682_v19 }
 0x171   : > { %v684_v20 = vpop.permute.xlu0 %683 }
 0x172   : > { %721 = vst.msk [vmem:[%s1875_s24 + $0x58] sm:$0xff] %vm709_vm4, %v684_v20 }
 0x173   : > { %v670_v21 = vpop.permute.xlu1 %669 }
 0x174   : > { %714 = vst.msk [vmem:[%s1875_s24 + $0x20] sm:$0xff] %vm709_vm4, %v670_v21 }
 0x175   : > { %v672_v22 = vpop.permute.xlu0 %671 }
 0x176   : > { %715 = vst.msk [vmem:[%s1875_s24 + $0x28] sm:$0xff] %vm709_vm4, %v672_v22 }
 0x177   : > { %v686_v23 = vpop.permute.xlu1 %685 }
 0x178   : > { %722 = vst.msk [vmem:[%s1875_s24 + $0x60] sm:$0xff] %vm709_vm4, %v686_v23 }
 0x179   : > { %v688_v24 = vpop.permute.xlu0 %687 }
 0x17a   : > { %723 = vst.msk [vmem:[%s1875_s24 + $0x68] sm:$0xff] %vm709_vm4, %v688_v24 }
 0x17b   : > { %v674_v25 = vpop.permute.xlu1 %673 }
 0x17c   : > { %716 = vst.msk [vmem:[%s1875_s24 + $0x30] sm:$0xff] %vm709_vm4, %v674_v25  ;;  %736 = sbr.rel (!%p1694_p4) target bundleno = 436 (0x1b4), region = 40 }
 0x17d   : > { %v676_v26 = vpop.permute.xlu0 %675 }
 0x17e   : > { %717 = vst.msk [vmem:[%s1875_s24 + $0x38] sm:$0xff] %vm709_vm4, %v676_v26 }
 0x17f   : > { %v690_v27 = vpop.permute.xlu1 %689 }
 0x180   : > { %724 = vst.msk [vmem:[%s1875_s24 + $0x70] sm:$0xff] %vm709_vm4, %v690_v27 }
 0x181   : > { %v692_v28 = vpop.permute.xlu0 %691 }
 0x182   : > { %725 = vst.msk [vmem:[%s1875_s24 + $0x78] sm:$0xff] %vm709_vm4, %v692_v28 }
 0x183   : > { %s2116_s27 = smov (!%p739_p8, %s738_s27), 16 }
 0x184   : > { %s1289_s8 = sshll.u32 %s2116_s27, 7 }
 0x185   : > { %p1292_p9 = scmp.eq.s32.totalorder %s1289_s8, 0 }
 0x186   : > { %s1922_s9 = sshrl.u32 (!%p1292_p9), %s2116_s27, 4 }
 0x187   : > { %747 = sbr.rel (%p1292_p9) target bundleno = 436 (0x1b4), region = 44  ;;  %p1293_p10 = scmp.le.s32.totalorder (!%p1292_p9), %s1922_s9, 0 }
 0x18e   : > { %1178 = sbr.rel (%p1293_p10) target bundleno = 415 (0x19f), region = 195  ;;  %s2106_s10 = smov (!%p1293_p10), %s1916_s7 }
 0x18f   : > { %s2107_s11 = smov (!%p1293_p10), %s1875_s24  ;;  %s1931_s12 = smov (!%p1293_p10), 0  }
 0x190   : > { %s1933_s13 = smov (!%p1293_p10), 0  }
 0x195 LB: >> { %v839_v29 = vld [vmem:[%s1579_s11] sm:$0xff]  ;;  %v841_v30 = vld [vmem:[%s1579_s11 + $0x8] sm:$0xff]  ;;  %v843_v31 = vld [vmem:[%s1579_s11 + $0x10] sm:$0xff]  ;;  %s871_s14 = sadd.s32 1, %s1583_s12  ;;  %s833_s13 = sadd.s32 1, %s1587_s13   ;;  %s1587_s13 = sphi %s1933_s13, %s833_s13   ;;  %s1583_s12 = sphi %s1931_s12, %s2108_s12   ;;  %s1579_s11 = sphi %s2107_s11, %s876_s11   ;;  %s1575_s10 = sphi %s2106_s10, %s877_s10  }
 0x196   : >> { %840 = vst [vmem:[%s1575_s10] sm:$0xff] %v839_v29  ;;  %842 = vst [vmem:[%s1575_s10 + $0x8] sm:$0xff] %v841_v30  ;;  %v845_v32 = vld [vmem:[%s1579_s11 + $0x18] sm:$0xff]  ;;  %v847_v33 = vld [vmem:[%s1579_s11 + $0x20] sm:$0xff]  ;;  %p872_p11 = scmp.ge.s32.totalorder %s871_s14, %s1922_s9  ;;  %p832_p12 = scmp.ge.s32.totalorder %s833_s13, %s1922_s9 }
 0x197   : >> { %844 = vst [vmem:[%s1575_s10 + $0x10] sm:$0xff] %v843_v31  ;;  %v849_v34 = vld [vmem:[%s1579_s11 + $0x28] sm:$0xff]  ;;  %846 = vst [vmem:[%s1575_s10 + $0x18] sm:$0xff] %v845_v32  ;;  %v851_v35 = vld [vmem:[%s1579_s11 + $0x30] sm:$0xff] }
 0x198   : >> { %848 = vst [vmem:[%s1575_s10 + $0x20] sm:$0xff] %v847_v33  ;;  %850 = vst [vmem:[%s1575_s10 + $0x28] sm:$0xff] %v849_v34  ;;  %v853_v36 = vld [vmem:[%s1579_s11 + $0x38] sm:$0xff]  ;;  %v855_v37 = vld [vmem:[%s1579_s11 + $0x40] sm:$0xff]  ;;  %s2118_s14 = smov (%p872_p11, %s871_s14), 0  ;;  %835 = sbr.rel (!%p832_p12) target bundleno = 405 (0x195), region = 201 }
 0x199   : >> { %852 = vst [vmem:[%s1575_s10 + $0x30] sm:$0xff] %v851_v35  ;;  %854 = vst [vmem:[%s1575_s10 + $0x38] sm:$0xff] %v853_v36  ;;  %v857_v38 = vld [vmem:[%s1579_s11 + $0x48] sm:$0xff]  ;;  %v859_v39 = vld [vmem:[%s1579_s11 + $0x50] sm:$0xff]  ;;  %s1294_s15 = sshll.u32 %s2118_s14, 7  ;;  %s2108_s12 = smov %s2118_s14 }
 0x19a   : >> { %856 = vst [vmem:[%s1575_s10 + $0x40] sm:$0xff] %v855_v37  ;;  %v861_v40 = vld [vmem:[%s1579_s11 + $0x58] sm:$0xff]  ;;  %858 = vst [vmem:[%s1575_s10 + $0x48] sm:$0xff] %v857_v38  ;;  %v863_v41 = vld [vmem:[%s1579_s11 + $0x60] sm:$0xff] }
 0x19b   : >> { %860 = vst [vmem:[%s1575_s10 + $0x50] sm:$0xff] %v859_v39  ;;  %862 = vst [vmem:[%s1575_s10 + $0x58] sm:$0xff] %v861_v40  ;;  %v865_v42 = vld [vmem:[%s1579_s11 + $0x68] sm:$0xff]  ;;  %v867_v43 = vld [vmem:[%s1579_s11 + $0x70] sm:$0xff] }
 0x19c   : >> { %864 = vst [vmem:[%s1575_s10 + $0x60] sm:$0xff] %v863_v41  ;;  %866 = vst [vmem:[%s1575_s10 + $0x68] sm:$0xff] %v865_v42  ;;  %v869_v44 = vld [vmem:[%s1579_s11 + $0x78] sm:$0xff]  ;;  %s876_s11 = scalar_lea.vmem %s1875_s24, %s1294_s15 [#allocation2]  }
 0x19d   : >> { %868 = vst [vmem:[%s1575_s10 + $0x70] sm:$0xff] %v867_v43  ;;  %870 = vst [vmem:[%s1575_s10 + $0x78] sm:$0xff] %v869_v44  ;;  %s877_s10 = scalar_lea.vmem %s1916_s7, %s1294_s15  }
 0x19f PF: > { %s1991_s16 = sand.u32 15, %s2116_s27   ;;  %s1319_s17 = sshll.u32 %s1922_s9, 7 }
 0x1a0   : > { %s882_s20 = scalar_lea.vmem %s1875_s24, %s1319_s17 [#allocation2]   ;;  %s884_s23 = scalar_lea.vmem %s1916_s7, %s1319_s17  }
 0x1a1   : > { %p1299_p13 = scmp.le.s32.totalorder %s1991_s16, 0 }
 0x1a2   : > { %s1589_s28 = smov (!%p1299_p13), %s884_s23   ;;  %s1593_s30 = smov (!%p1299_p13), %s882_s20  }
 0x1a3   : > { %1192 = sbr.rel (%p1299_p13) target bundleno = 436 (0x1b4), region = 206  ;;  %s1597_s6 = smov (!%p1299_p13), 0  }
 0x1a4   : > { %s1601_s8 = smov (!%p1299_p13), 0  }
 0x1aa LB: >> { %v894_v45 = vld [vmem:[%s1595_s30] sm:$0xff]  ;;  %s896_s27 = sadd.s32 1, %s1599_s6  ;;  %s888_s8 = sadd.s32 1, %s1603_s8   ;;  %s1603_s8 = sphi %s1601_s8, %s888_s8   ;;  %s1599_s6 = sphi %s1597_s6, %s1598_s6   ;;  %s1595_s30 = sphi %s1593_s30, %s901_s30   ;;  %s1591_s28 = sphi %s1589_s28, %s902_s28  }
 0x1ab   : >> { %895 = vst [vmem:[%s1591_s28] sm:$0xff] %v894_v45  ;;  %p897_p0 = scmp.ge.s32.totalorder %s896_s27, %s1991_s16  ;;  %p887_p1 = scmp.ge.s32.totalorder %s888_s8, %s1991_s16 }
 0x1ad   : >> { %s2120_s27 = smov (%p897_p0, %s896_s27), 0  ;;  %890 = sbr.rel (!%p887_p1) target bundleno = 426 (0x1aa), region = 212 }
 0x1ae   : >> { %s1300_s24 = sshll.u32 %s2120_s27, 3  ;;  %s1598_s6 = smov %s2120_s27  }
 0x1af   : >> { %s901_s30 = scalar_lea.vmem %s882_s20, %s1300_s24 [#allocation2]   ;;  %s902_s28 = scalar_lea.vmem %s884_s23, %s1300_s24  }
 0x1b4 PF: > { %908 = sbr.rel (!%p1694_p4) target bundleno = 492 (0x1ec), region = 92  ;;  %s910_s7 = ssub.s32 (%p1694_p4), 63, %s1702_s29 }
 0x1b5   : > { %s1321_s9 = sshll.u32 (%p1694_p4), %s1682_s21, 7  ;;  %p911_p2 = scmp.lt.s32.totalorder (%p1694_p4), %s910_s7, 16 }
 0x1b6   : > { %s2006_s12 = scalar_lea.vmem (%p1694_p4), %s2104_s5, %s1321_s9  }
 0x1bb   : > { %s2122_s7 = smov (!%p911_p2, %s910_s7), 16 }
 0x1bc   : > { %s1303_s13 = sshll.u32 %s2122_s7, 7 }
 0x1bd   : > { %p1306_p3 = scmp.eq.s32.totalorder %s1303_s13, 0 }
 0x1be   : > { %s2012_s14 = sshrl.u32 (!%p1306_p3), %s2122_s7, 4 }
 0x1bf   : > { %919 = sbr.rel (%p1306_p3) target bundleno = 492 (0x1ec), region = 96  ;;  %p1307_p4 = scmp.le.s32.totalorder (!%p1306_p3), %s2012_s14, 0 }
 0x1c6   : > { %1206 = sbr.rel (%p1307_p4) target bundleno = 471 (0x1d7), region = 217  ;;  %s2109_s21 = smov (!%p1307_p4), %s2006_s12 }
 0x1c7   : > { %s2110_s26 = smov (!%p1307_p4), %s1785_s18  ;;  %s2021_s29 = smov (!%p1307_p4), 0  }
 0x1c8   : > { %s2023_s15 = smov (!%p1307_p4), 0  }
 0x1cd LB: >> { %v1011_v46 = vld [vmem:[%s1611_s26] sm:$0xff]  ;;  %v1013_v48 = vld [vmem:[%s1611_s26 + $0x8] sm:$0xff]  ;;  %v1015_v49 = vld [vmem:[%s1611_s26 + $0x10] sm:$0xff]  ;;  %s1043_s16 = sadd.s32 1, %s1615_s29  ;;  %s1005_s15 = sadd.s32 1, %s1619_s15   ;;  %s1619_s15 = sphi %s2023_s15, %s1005_s15   ;;  %s1615_s29 = sphi %s2021_s29, %s2111_s29   ;;  %s1611_s26 = sphi %s2110_s26, %s1048_s26   ;;  %s1607_s21 = sphi %s2109_s21, %s1049_s21  }
 0x1ce   : >> { %1012 = vst [vmem:[%s1607_s21] sm:$0xff] %v1011_v46  ;;  %1014 = vst [vmem:[%s1607_s21 + $0x8] sm:$0xff] %v1013_v48  ;;  %v1017_v50 = vld [vmem:[%s1611_s26 + $0x18] sm:$0xff]  ;;  %v1019_v51 = vld [vmem:[%s1611_s26 + $0x20] sm:$0xff]  ;;  %p1044_p5 = scmp.ge.s32.totalorder %s1043_s16, %s2012_s14  ;;  %p1004_p6 = scmp.ge.s32.totalorder %s1005_s15, %s2012_s14 }
 0x1cf   : >> { %1016 = vst [vmem:[%s1607_s21 + $0x10] sm:$0xff] %v1015_v49  ;;  %v1021_v53 = vld [vmem:[%s1611_s26 + $0x28] sm:$0xff]  ;;  %1018 = vst [vmem:[%s1607_s21 + $0x18] sm:$0xff] %v1017_v50  ;;  %v1023_v56 = vld [vmem:[%s1611_s26 + $0x30] sm:$0xff] }
 0x1d0   : >> { %1020 = vst [vmem:[%s1607_s21 + $0x20] sm:$0xff] %v1019_v51  ;;  %1022 = vst [vmem:[%s1607_s21 + $0x28] sm:$0xff] %v1021_v53  ;;  %v1025_v57 = vld [vmem:[%s1611_s26 + $0x38] sm:$0xff]  ;;  %v1027_v59 = vld [vmem:[%s1611_s26 + $0x40] sm:$0xff]  ;;  %s2124_s16 = smov (%p1044_p5, %s1043_s16), 0  ;;  %1007 = sbr.rel (!%p1004_p6) target bundleno = 461 (0x1cd), region = 223 }
 0x1d1   : >> { %1024 = vst [vmem:[%s1607_s21 + $0x30] sm:$0xff] %v1023_v56  ;;  %1026 = vst [vmem:[%s1607_s21 + $0x38] sm:$0xff] %v1025_v57  ;;  %v1029_v60 = vld [vmem:[%s1611_s26 + $0x48] sm:$0xff]  ;;  %v1031_v52 = vld [vmem:[%s1611_s26 + $0x50] sm:$0xff]  ;;  %s1308_s17 = sshll.u32 %s2124_s16, 7  ;;  %s2111_s29 = smov %s2124_s16 }
 0x1d2   : >> { %1028 = vst [vmem:[%s1607_s21 + $0x40] sm:$0xff] %v1027_v59  ;;  %v1033_v61 = vld [vmem:[%s1611_s26 + $0x58] sm:$0xff]  ;;  %1030 = vst [vmem:[%s1607_s21 + $0x48] sm:$0xff] %v1029_v60  ;;  %v1035_v62 = vld [vmem:[%s1611_s26 + $0x60] sm:$0xff] }
 0x1d3   : >> { %1032 = vst [vmem:[%s1607_s21 + $0x50] sm:$0xff] %v1031_v52  ;;  %1034 = vst [vmem:[%s1607_s21 + $0x58] sm:$0xff] %v1033_v61  ;;  %v1037_v63 = vld [vmem:[%s1611_s26 + $0x68] sm:$0xff]  ;;  %v1039_v0 = vld [vmem:[%s1611_s26 + $0x70] sm:$0xff] }
 0x1d4   : >> { %1036 = vst [vmem:[%s1607_s21 + $0x60] sm:$0xff] %v1035_v62  ;;  %1038 = vst [vmem:[%s1607_s21 + $0x68] sm:$0xff] %v1037_v63  ;;  %v1041_v1 = vld [vmem:[%s1611_s26 + $0x78] sm:$0xff]  ;;  %s1048_s26 = scalar_lea.vmem %s1785_s18, %s1308_s17 [#allocation3]  }
 0x1d5   : >> { %1040 = vst [vmem:[%s1607_s21 + $0x70] sm:$0xff] %v1039_v0  ;;  %1042 = vst [vmem:[%s1607_s21 + $0x78] sm:$0xff] %v1041_v1  ;;  %s1049_s21 = scalar_lea.vmem %s2006_s12, %s1308_s17  }
 0x1d7 PF: > { %s2081_s20 = sand.u32 15, %s2122_s7   ;;  %s1322_s23 = sshll.u32 %s2012_s14, 7 }
 0x1d8   : > { %s1054_s28 = scalar_lea.vmem %s1785_s18, %s1322_s23 [#allocation3]   ;;  %s1056_s30 = scalar_lea.vmem %s2006_s12, %s1322_s23  }
 0x1d9   : > { %p1313_p7 = scmp.le.s32.totalorder %s2081_s20, 0 }
 0x1da   : > { %s1621_s6 = smov (!%p1313_p7), %s1056_s30   ;;  %s1625_s8 = smov (!%p1313_p7), %s1054_s28  }
 0x1db   : > { %1220 = sbr.rel (%p1313_p7) target bundleno = 492 (0x1ec), region = 228  ;;  %s1629_s27 = smov (!%p1313_p7), 0  }
 0x1dc   : > { %s1633_s24 = smov (!%p1313_p7), 0  }
 0x1e2 LB: >> { %v1066_v2 = vld [vmem:[%s1627_s8] sm:$0xff]  ;;  %s1068_s7 = sadd.s32 1, %s1631_s27  ;;  %s1060_s24 = sadd.s32 1, %s1635_s24   ;;  %s1635_s24 = sphi %s1633_s24, %s1060_s24   ;;  %s1631_s27 = sphi %s1629_s27, %s1630_s27   ;;  %s1627_s8 = sphi %s1625_s8, %s1073_s8   ;;  %s1623_s6 = sphi %s1621_s6, %s1074_s6  }
 0x1e3   : >> { %1067 = vst [vmem:[%s1623_s6] sm:$0xff] %v1066_v2  ;;  %p1069_p8 = scmp.ge.s32.totalorder %s1068_s7, %s2081_s20  ;;  %p1059_p9 = scmp.ge.s32.totalorder %s1060_s24, %s2081_s20 }
 0x1e5   : >> { %s2126_s7 = smov (%p1069_p8, %s1068_s7), 0  ;;  %1062 = sbr.rel (!%p1059_p9) target bundleno = 482 (0x1e2), region = 234 }
 0x1e6   : >> { %s1314_s18 = sshll.u32 %s2126_s7, 3  ;;  %s1630_s27 = smov %s2126_s7  }
 0x1e7   : >> { %s1073_s8 = scalar_lea.vmem %s1054_s28, %s1314_s18 [#allocation3]   ;;  %s1074_s6 = scalar_lea.vmem %s1056_s30, %s1314_s18  }
 0x1ec PF: > { %p13_p10 = scmp.ge.s32.totalorder %s1684_s22, 6   ;;  %s2112_s18 = smov %s1567_s19 }
 0x1ed   : > { %s2113_s19 = smov %s1692_s25  ;;  %s2114_s20 = smov %s1684_s22 }
 0x1ee   :  { %15 = sbr.rel (!%p13_p10) target bundleno = 2 (0x2), region = 245 }

</bundles_post_ra>
